<compile_context>
chip_gen: v5e
topology: v5e:2x2
jax: 0.10.0
libtpu: 0.0.40
codegen_flags: <defaults>
</compile_context>

<pallas_src>
import jax
import jax.numpy as jnp
from jax.experimental import pallas as pl
from jax.experimental.pallas import tpu as pltpu


def _make_broadcast_kernel(tb: int, rem: int, num_blocks: int, chw: int):
    """Builds the kernel body for fixed (trace-time) tiling constants."""

    def kernel(const_ref, out_hbm, scratch, sems):
        # const_ref: (1, chw)  learned constant, resident in VMEM.
        # out_hbm:   (n, chw)  raw HBM output ref (memory_space=pl.ANY).
        # scratch:   (tb, chw) VMEM slab: filled once, re-DMA'd every step.
        # sems:      (2,)      DMA semaphores for 2-deep writeback pipelining.
        i = pl.program_id(0)
        slot = i % 2
        is_last = i == num_blocks - 1

        # Fill the replicated slab exactly once.  Grid axis is "arbitrary"
        # (sequential) so step 0 always runs first.  Since this is no longer
        # per-step work, a plain broadcast is fine (stride-0 sublane-broadcast
        # read would be the micro-optimal equivalent).
        @pl.when(i == 0)
        def _():
            scratch[...] = jnp.broadcast_to(const_ref[...], (tb, chw))

        def full_copy(sem_ref, row0):
            return pltpu.make_async_copy(
                scratch, out_hbm.at[pl.ds(row0, tb), :], sem_ref)

        def tail_copy(sem_ref):
            return pltpu.make_async_copy(
                scratch.at[pl.ds(0, rem), :],
                out_hbm.at[pl.ds(i * tb, rem), :],
                sem_ref)

        # Start this step's writeback straight to HBM.
        if rem == 0:
            full_copy(sems.at[slot], i * tb).start()
        else:
            @pl.when(jnp.logical_not(is_last))
            def _():
                full_copy(sems.at[slot], i * tb).start()

            @pl.when(is_last)
            def _():
                tail_copy(sems.at[slot]).start()

        # Drain the previous step's DMA (always a full block; only the last
        # block can be partial).  Keeps two writebacks in flight.
        if num_blocks > 1:
            @pl.when(i > 0)
            def _():
                full_copy(sems.at[1 - slot], 0).wait()

        # At the final step, also drain this step's DMA before kernel exit.
        if rem == 0:
            @pl.when(is_last)
            def _():
                full_copy(sems.at[slot], i * tb).wait()
        else:
            @pl.when(is_last)
            def _():
                tail_copy(sems.at[slot]).wait()

    return kernel


def input_block_forward(w: jax.Array, const: jax.Array,
                        *, target_block_bytes: int = 8 * 1024 * 1024
                        ) -> jax.Array:
    """Pallas implementation of InputBlock.forward.

    Args:
      w:     latent codes, shape (N, w_dim). Only the batch size is used
             (matching the PyTorch module, which ignores w's values).
      const: learned constant, shape (1, C, H, W).
      target_block_bytes: per-step VMEM scratch budget (batch-tile size).

    Returns:
      (N, C, H, W) array: const broadcast/repeated across the batch.
    """
    n = w.shape[0]
    _, c, h, wres = const.shape
    chw = c * h * wres
    dtype = const.dtype
    itemsize = dtype.itemsize
    bytes_per_row = chw * itemsize

    # Rows per block: as many as fit in ~target_block_bytes of VMEM scratch
    # (single-buffered — manual DMA means no double-buffered output copy),
    # rounded down to a sublane multiple when possible.  Small batches
    # collapse to a single grid step.
    max_rows = max(1, target_block_bytes // bytes_per_row)
    if max_rows >= 8:
        max_rows = (max_rows // 8) * 8
    tb = min(n, max_rows)
    num_blocks = (n + tb - 1) // tb
    rem = n % tb  # != 0  ->  last block is partial

    const2d = const.reshape(1, chw)  # lane-dense view (free layout plumbing)

    scratch_bytes = tb * chw * itemsize
    vmem_limit = int(scratch_bytes + chw * itemsize + (4 << 20))

    out2d = pl.pallas_call(
        _make_broadcast_kernel(tb, rem, num_blocks, chw),
        out_shape=jax.ShapeDtypeStruct((n, chw), dtype),
        grid_spec=pltpu.PrefetchScalarGridSpec(
            num_scalar_prefetch=0,
            grid=(num_blocks,),
            in_specs=[
                # Tiny constant operand: resident in VMEM once for the whole
                # grid, no per-step pipelined copies.
                pl.BlockSpec(memory_space=pltpu.MemorySpace.VMEM),
            ],
            # Raw HBM output ref; written via explicit DMA from the scratch.
            out_specs=pl.BlockSpec(memory_space=pl.ANY),
            scratch_shapes=[
                pltpu.VMEM((tb, chw), dtype),
                pltpu.SemaphoreType.DMA((2,)),
            ],
        ),
        compiler_params=pltpu.CompilerParams(
            # Sequential grid: required by the fill-once scratch and the
            # cross-step DMA pipeline.  The op is HBM-write-bound anyway.
            dimension_semantics=("arbitrary",),
            vmem_limit_bytes=vmem_limit,
        ),
        cost_estimate=pl.CostEstimate(
            flops=0,
            transcendentals=0,
            bytes_accessed=int(n * chw * itemsize + chw * itemsize),
        ),
    )(const2d)

    return out2d.reshape(n, c, h, wres)


if __name__ == "__main__":
    # Module config (small, consistent with the module's __init__):
    init_resolution = 16
    channels = 4
    batch = 2
    w_dim = 32  # latent dim; only the batch size matters for this block

    key = jax.random.PRNGKey(0)
    k_const, k_w, k_w2 = jax.random.split(key, 3)

    # Deterministic "parameter" init (torch.randn-equivalent shape).
    const = jax.random.normal(
        k_const, (1, channels, init_resolution, init_resolution),
        dtype=jnp.float32)
    w = jax.random.normal(k_w, (batch, w_dim), dtype=jnp.float32)

    out = jax.block_until_ready(input_block_forward(w, const))
    ref = jnp.broadcast_to(const, (batch,) + const.shape[1:])
    assert out.shape == (batch, channels, init_resolution, init_resolution)
    assert jnp.array_equal(out, ref)

    # Also exercise the multi-block + partial-tail writeback path at small
    # shapes by shrinking the per-block byte budget (tb=4 rows, 3 blocks,
    # 2-row tail).
    batch2 = 10
    w2 = jax.random.normal(k_w2, (batch2, w_dim), dtype=jnp.float32)
    out2 = jax.block_until_ready(
        input_block_forward(w2, const, target_block_bytes=16 * 1024))
    ref2 = jnp.broadcast_to(const, (batch2,) + const.shape[1:])
    assert jnp.array_equal(out2, ref2)

    print("KERNEL_OK")
</pallas_src>

<mosaic_0001>
module attributes {stable_mosaic.version = 11 : i64} {
  func.func @kernel(%arg0: i32, %arg1: memref<1x1024xf32, #tpu.memory_space<vmem>>, %arg2: memref<2x1024xf32, #tpu.memory_space<any>>, %arg3: memref<2x1024xf32, #tpu.memory_space<vmem>>, %arg4: memref<2x!tpu.dma_semaphore, #tpu.memory_space<semaphore_mem>>) attributes {dimension_semantics = [#tpu.dimension_semantics<arbitrary>], iteration_bounds = array<i64: 1>, scalar_prefetch = 0 : i64, scratch_operands = 2 : i64, tpu.core_type = #tpu.core_type<tc>, window_params = [{pipeline_mode = #tpu.pipeline_mode<synchronous>, transform_indices = @transform_0, window_bounds = array<i64: 1, 1024>}, {}]} {
    %c2_i32 = arith.constant 2 : i32
    %c0_i32 = arith.constant 0 : i32
    %0 = arith.cmpi eq, %c2_i32, %c0_i32 : i32
    %c1_i32 = arith.constant 1 : i32
    %1 = arith.select %0, %c1_i32, %c2_i32 : i32
    %2 = arith.remsi %arg0, %1 : i32
    %c0_i32_0 = arith.constant 0 : i32
    %3 = arith.cmpi ne, %2, %c0_i32_0 : i32
    %c0_i32_1 = arith.constant 0 : i32
    %4 = arith.cmpi slt, %2, %c0_i32_1 : i32
    %c0_i32_2 = arith.constant 0 : i32
    %5 = arith.cmpi slt, %1, %c0_i32_2 : i32
    %6 = arith.xori %4, %5 : i1
    %7 = arith.andi %6, %3 : i1
    %8 = arith.addi %2, %1 : i32
    %9 = arith.select %7, %8, %2 : i32
    %c0_i32_3 = arith.constant 0 : i32
    %10 = arith.cmpi eq, %arg0, %c0_i32_3 : i32
    %c0_i32_4 = arith.constant 0 : i32
    %11 = arith.cmpi eq, %arg0, %c0_i32_4 : i32
    %12 = arith.extui %11 : i1 to i32
    %c0_i32_5 = arith.constant 0 : i32
    %13 = arith.cmpi ne, %12, %c0_i32_5 : i32
    scf.if %13 {
      %c0 = arith.constant 0 : index
      %c0_9 = arith.constant 0 : index
      %20 = vector.load %arg1[%c0, %c0_9] : memref<1x1024xf32, #tpu.memory_space<vmem>>, vector<1x1024xf32>
      %21 = vector.shape_cast %20 : vector<1x1024xf32> to vector<1x1024xf32>
      %22 = vector.broadcast %21 : vector<1x1024xf32> to vector<2x1024xf32>
      %c0_10 = arith.constant 0 : index
      %c0_11 = arith.constant 0 : index
      %23 = vector.load %arg3[%c0_10, %c0_11] : memref<2x1024xf32, #tpu.memory_space<vmem>>, vector<2x1024xf32>
      tpu.vector_store %arg3[%c0_10, %c0_11], %22 {strides = array<i32>} : memref<2x1024xf32, #tpu.memory_space<vmem>>, vector<2x1024xf32>,
    } else {
    }
    %c2_i32_6 = arith.constant 2 : i32
    %14 = arith.muli %arg0, %c2_i32_6 : i32
    %c0_i32_7 = arith.constant 0 : i32
    %15 = tpu.memref_slice %arg2[%14, %c0_i32_7] : memref<2x1024xf32, #tpu.memory_space<any>> -> memref<2x1024xf32, #tpu.memory_space<any>>
    %16 = tpu.memref_slice %arg4[%9] : memref<2x!tpu.dma_semaphore, #tpu.memory_space<semaphore_mem>> -> memref<1x!tpu.dma_semaphore, #tpu.memory_space<semaphore_mem>>
    %17 = tpu.memref_squeeze %16 : memref<1x!tpu.dma_semaphore, #tpu.memory_space<semaphore_mem>> -> memref<!tpu.dma_semaphore, #tpu.memory_space<semaphore_mem>>
    tpu.enqueue_dma source(%arg3 : memref<2x1024xf32, #tpu.memory_space<vmem>>) target(%15 : memref<2x1024xf32, #tpu.memory_space<any>>) target_semaphore(%17 : memref<!tpu.dma_semaphore, #tpu.memory_space<semaphore_mem>>)
    %18 = arith.extui %10 : i1 to i32
    %c0_i32_8 = arith.constant 0 : i32
    %19 = arith.cmpi ne, %18, %c0_i32_8 : i32
    scf.if %19 {
      %c2_i32_9 = arith.constant 2 : i32
      %20 = arith.muli %arg0, %c2_i32_9 : i32
      %c0_i32_10 = arith.constant 0 : i32
      %21 = tpu.memref_slice %arg2[%20, %c0_i32_10] : memref<2x1024xf32, #tpu.memory_space<any>> -> memref<2x1024xf32, #tpu.memory_space<any>>
      %22 = tpu.memref_slice %arg4[%9] : memref<2x!tpu.dma_semaphore, #tpu.memory_space<semaphore_mem>> -> memref<1x!tpu.dma_semaphore, #tpu.memory_space<semaphore_mem>>
      %23 = tpu.memref_squeeze %22 : memref<1x!tpu.dma_semaphore, #tpu.memory_space<semaphore_mem>> -> memref<!tpu.dma_semaphore, #tpu.memory_space<semaphore_mem>>
      tpu.wait_dma2 semaphore(%23 : memref<!tpu.dma_semaphore, #tpu.memory_space<semaphore_mem>>) src(%arg3 : memref<2x1024xf32, #tpu.memory_space<vmem>>) dst(%21 : memref<2x1024xf32, #tpu.memory_space<any>>)
    } else {
    }
    return
  }
  func.func @transform_0(%arg0: i32) -> (i32, i32) {
    %c0_i32 = arith.constant 0 : i32
    %c0_i32_0 = arith.constant 0 : i32
    %c0_i32_1 = arith.constant 0 : i32
    return %c0_i32, %c0_i32_0 : i32, i32
  }
}

</mosaic_0001>

<bundles_post_ra>
// kernel: tpu_custom_call.1
= control target key start
LH: loop header
LB: loop body
LE: loop exit
PB: predicated region body
PF: predicated region fallthrough
CT: control target
= control target key end

     0   :  { %6 = vsyncpa [#allocation5], 0  ;;  %s163_s9 = smov [#allocation4]   ;;  %s185_s0 = inlined_call_operand.hbm [shape: f32[1,1024], index: 0, kind: input, shape index: {}]   ;;  %s186_s1 = inlined_call_operand.hbm [shape: f32[2,1024], index: 1, kind: output, shape index: {}]  }
   0x1   :  { %s12_s8 = sshll.u32 %s185_s0, 4  ;;  %s14_s10 = sshll.u32 %s163_s9, 4  ;;  %s13_s8 = int_to_ptr.hbm [resolvable:$true] %s12_s8  ;;  %s15_s10 = int_to_ptr.vmem [resolvable:$true] %s14_s10 }
   0x2   :  { %17 = dma.hbm_to_vmem [thread:$0]  %s13_s8, 128, %s15_s10, [#allocation5]  }
   0x3   :  { %159 = dma.done.wait [#allocation5], 128  }
   0x4   :  { %160 = vsyncadd [#allocation5], 4294967168  ;;  %v34_v0 = vld [vmem:[#allocation4] sm:$0xff]  ;;  %vm50_vm0 = vcmask 1041408   ;;  %vm52_vm1 = vcmask 1045508   ;;  %vm54_vm2 = vcmask 1043456  }
   0x5   :  { %v36_v1 = vperm.slane %v34_v0, 0  ;;  %v37_v2 = vperm.slane %v34_v0, 1  ;;  %v38_v3 = vperm.slane %v34_v0, 2  ;;  %v39_v4 = vperm.slane %v34_v0, 3  ;;  %s164_s0 = smov [#allocation2]   ;;  %s79_s14 = sshll.u32 %s186_s1, 4  ;;  %s80_s14 = int_to_ptr.hbm [resolvable:$true] %s79_s14 }
   0x6   :  { %v40_v5 = vperm.slane %v34_v0, 4  ;;  %v41_v6 = vperm.slane %v34_v0, 5  ;;  %v42_v7 = vperm.slane %v34_v0, 6  ;;  %v43_v8 = vperm.slane %v34_v0, 7  ;;  %s77_s11 = sshll.u32 %s164_s0, 4  ;;  %s78_s11 = int_to_ptr.vmem [resolvable:$true] %s77_s11 }
   0x7   :  { %v44_v9 = vrot.slane %v37_v2, 6  ;;  %v45_v10 = vrot.slane %v38_v3, 4  ;;  %v46_v11 = vrot.slane %v39_v4, 2 }
   0x8   :  { %v47_v12 = vrot.slane %v41_v6, 6  ;;  %v48_v13 = vrot.slane %v42_v7, 4  ;;  %v49_v14 = vrot.slane %v43_v8, 2 }
   0x9   :  { %v51_v15 = vsel %vm50_vm0, %v36_v1, %v44_v9  ;;  %v53_v16 = vsel %vm52_vm1, %v45_v10, %v46_v11 }
   0xa   :  { %v55_v17 = vsel %vm54_vm2, %v51_v15, %v53_v16  ;;  %v56_v18 = vsel %vm50_vm0, %v40_v5, %v47_v12  ;;  %v57_v19 = vsel %vm52_vm1, %v48_v13, %v49_v14 }
   0xb   :  { %61 = vst [vmem:[#allocation2] sm:$0xff] %v55_v17  ;;  %v58_v20 = vsel %vm54_vm2, %v56_v18, %v57_v19 }
   0xc   :  { %62 = vst [vmem:[#allocation2 + $0x8] sm:$0xff] %v58_v20 }
   0xd   :  { %82 = dma.vmem_to_hbm [thread:$0]  %s78_s11, 256, %s80_s14, [#allocation3] }
   0xe   :  { %161 = dma.done.wait [#allocation3], 256 }
   0xf   :  { %162 = vsyncadd [#allocation3], 4294967040 }
  0x10   :  { %90 = vsyncpa [#allocation5], 1 }
  0x11   :  { %91 = vsyncmov [#allocation3] }
  0x14   :  { %s92_s1 = vpop.sfrf %91 }
  0x15   :  { %p107_p0 = scmp.ne.s32.totalorder %s92_s1, 0 }
  0x17   :  { %96 = shalt.err (%p107_p0)  }
  0x18   :  { %98 = vsyncmov [#allocation3 + $0x1] }
  0x1b   :  { %s99_s15 = vpop.sfrf %98 }
  0x1c   :  { %p108_p1 = scmp.ne.s32.totalorder %s99_s15, 0 }
  0x1e   :  { %103 = shalt.err (%p108_p1)  }

</bundles_post_ra>
